<compile_context>
chip_gen: v6e
topology: v6e:2x2x1
jax: 0.10.0
libtpu: 0.0.40
codegen_flags: <defaults>
</compile_context>

<pallas_src>
import jax
import jax.numpy as jnp
from jax.experimental import pallas as pl
from jax.experimental.pallas import tpu as pltpu

_LANES = 128
_SUBLANES = 8


def _logreg_kernel(p_ref, x_ref, o_ref):
    # p_ref: SMEM (3,) f32 = [w0, w1, b]   (scalar-prefetched)
    # x_ref: VMEM (F=2, tile_r, 128)       o_ref: VMEM (tile_r, 128)
    w0 = p_ref[0]
    w1 = p_ref[1]
    b = p_ref[2]
    x0 = x_ref[0].astype(jnp.float32)   # (tile_r, 128)
    x1 = x_ref[1].astype(jnp.float32)   # (tile_r, 128)
    # z = x @ W^T + b as two VPU FMAs (no MXU, no cross-lane reduce).
    z = w0 * x0 + w1 * x1 + b
    # Exact sigmoid: exp on the EUP, one vector divide (plenty of VPU slack).
    o_ref[...] = (1.0 / (1.0 + jnp.exp(-z))).astype(o_ref.dtype)


def _round_up(a: int, m: int) -> int:
    return ((a + m - 1) // m) * m


def logistic_regression(x, weight, bias, *, max_tile_r: int = 4096):
    """x: (N, F=2); weight: (1, F); bias: (1,). Returns (N, 1) in x.dtype.

    max_tile_r rows of 128 samples per grid step -> ~4 MiB of f32 input per
    tile (double-buffered footprint ~12 MiB), HBM-roofline on v5e/v6e/v7x.
    """
    n, f = x.shape
    assert f == 2, "this kernel specializes nn.Linear(2, 1)"

    # rows of 128 samples; tile_r is a sublane (8) multiple.
    r = _round_up(n, _LANES) // _LANES
    tile_r = min(max_tile_r, _round_up(r, _SUBLANES))
    r_pad = _round_up(r, tile_r)          # for small N this is just round_up(r, 8)
    n_pad = r_pad * _LANES

    # Pad the batch, go feature-major, reshape to a dense (2, rows, 128) slab.
    # Keep x's dtype for the HBM->VMEM DMA; cast to f32 happens in-kernel.
    x_pad = jnp.pad(x, ((0, n_pad - n), (0, 0)))
    x_t = x_pad.T.reshape(f, r_pad, _LANES)

    # 3 scalars [w0, w1, b] -> SMEM via scalar prefetch.
    params = jnp.concatenate(
        [weight.reshape(-1).astype(jnp.float32), bias.reshape(-1).astype(jnp.float32)]
    )

    out = pl.pallas_call(
        _logreg_kernel,
        out_shape=jax.ShapeDtypeStruct((r_pad, _LANES), x.dtype),
        grid_spec=pltpu.PrefetchScalarGridSpec(
            num_scalar_prefetch=1,
            grid=(r_pad // tile_r,),
            # index_maps receive the prefetch ref as a trailing positional arg.
            in_specs=[pl.BlockSpec((f, tile_r, _LANES), lambda i, p: (0, i, 0))],
            out_specs=pl.BlockSpec((tile_r, _LANES), lambda i, p: (i, 0)),
        ),
        compiler_params=pltpu.CompilerParams(
            dimension_semantics=("parallel",),
            # Raise above v5e's 16 MiB / v6e-v7x's 32 MiB scoped defaults while
            # leaving headroom inside v7x's 64 MiB/TC physical VMEM.
            vmem_limit_bytes=48 * 1024 * 1024,
        ),
    )(params, x_t)

    # Back to the PyTorch-module output shape (N, 1); padded tail sliced off.
    return out.reshape(n_pad)[:n].reshape(n, 1)


if __name__ == "__main__":
    key = jax.random.PRNGKey(0)
    kx, kw, kb = jax.random.split(key, 3)

    N, F = 8, 2  # iris subset uses 2 features (sepal length, petal length)
    x = jax.random.normal(kx, (N, F), dtype=jnp.float32)

    # Deterministic init mimicking nn.Linear(2, 1): U(-1/sqrt(F), 1/sqrt(F))
    bound = 1.0 / jnp.sqrt(jnp.float32(F))
    weight = jax.random.uniform(kw, (1, F), minval=-bound, maxval=bound, dtype=jnp.float32)
    bias = jax.random.uniform(kb, (1,), minval=-bound, maxval=bound, dtype=jnp.float32)

    out = jax.block_until_ready(logistic_regression(x, weight, bias))

    # Reference check against plain JAX (exact sigmoid in-kernel -> tight tol).
    ref = jax.nn.sigmoid(x @ weight.T + bias)
    assert out.shape == (N, 1)
    assert jnp.allclose(out, ref, atol=1e-5, rtol=1e-5), (out, ref)

    print("KERNEL_OK")
</pallas_src>

<mosaic_0001>
module attributes {stable_mosaic.version = 11 : i64} {
  func.func @_logreg_kernel(%arg0: i32, %arg1: memref<3xf32, #tpu.memory_space<smem>>, %arg2: memref<2x8x128xf32, #tpu.memory_space<vmem>>, %arg3: memref<8x128xf32, #tpu.memory_space<vmem>>) attributes {dimension_semantics = [#tpu.dimension_semantics<parallel>], iteration_bounds = array<i64: 1>, scalar_prefetch = 1 : i64, scratch_operands = 0 : i64, tpu.core_type = #tpu.core_type<tc>, window_params = [{transform_indices = @transform_0, window_bounds = array<i64: 2, 8, 128>}, {transform_indices = @transform_1, window_bounds = array<i64: 8, 128>}]} {
    %c0 = arith.constant 0 : index
    %0 = memref.load %arg1[%c0] : memref<3xf32, #tpu.memory_space<smem>>
    %c1 = arith.constant 1 : index
    %1 = memref.load %arg1[%c1] : memref<3xf32, #tpu.memory_space<smem>>
    %c2 = arith.constant 2 : index
    %2 = memref.load %arg1[%c2] : memref<3xf32, #tpu.memory_space<smem>>
    %c0_0 = arith.constant 0 : index
    %c0_1 = arith.constant 0 : index
    %c0_2 = arith.constant 0 : index
    %3 = vector.load %arg2[%c0_0, %c0_1, %c0_2] : memref<2x8x128xf32, #tpu.memory_space<vmem>>, vector<1x8x128xf32>
    %4 = vector.shape_cast %3 : vector<1x8x128xf32> to vector<8x128xf32>
    %c1_3 = arith.constant 1 : index
    %c0_4 = arith.constant 0 : index
    %c0_5 = arith.constant 0 : index
    %5 = vector.load %arg2[%c1_3, %c0_4, %c0_5] : memref<2x8x128xf32, #tpu.memory_space<vmem>>, vector<1x8x128xf32>
    %6 = vector.shape_cast %5 : vector<1x8x128xf32> to vector<8x128xf32>
    %7 = vector.broadcast %0 : f32 to vector<8x128xf32>
    %8 = arith.mulf %7, %4 : vector<8x128xf32>
    %9 = vector.broadcast %1 : f32 to vector<8x128xf32>
    %10 = arith.mulf %9, %6 : vector<8x128xf32>
    %11 = arith.addf %8, %10 : vector<8x128xf32>
    %12 = vector.broadcast %2 : f32 to vector<8x128xf32>
    %13 = arith.addf %11, %12 : vector<8x128xf32>
    %cst = arith.constant 0.000000e+00 : f32
    %14 = vector.broadcast %cst : f32 to vector<8x128xf32>
    %15 = arith.subf %14, %13 : vector<8x128xf32>
    %16 = math.exp %15 : vector<8x128xf32>
    %cst_6 = arith.constant 1.000000e+00 : f32
    %17 = vector.broadcast %cst_6 : f32 to vector<8x128xf32>
    %18 = arith.addf %17, %16 : vector<8x128xf32>
    %cst_7 = arith.constant 1.000000e+00 : f32
    %19 = vector.broadcast %cst_7 : f32 to vector<8x128xf32>
    %20 = arith.divf %19, %18 : vector<8x128xf32>
    %c0_8 = arith.constant 0 : index
    %c0_9 = arith.constant 0 : index
    %21 = vector.load %arg3[%c0_8, %c0_9] : memref<8x128xf32, #tpu.memory_space<vmem>>, vector<8x128xf32>
    tpu.vector_store %arg3[%c0_8, %c0_9], %20 {strides = array<i32>} : memref<8x128xf32, #tpu.memory_space<vmem>>, vector<8x128xf32>,
    return
  }
  func.func @transform_0(%arg0: i32, %arg1: memref<3xf32, #tpu.memory_space<smem>>) -> (i32, i32, i32) {
    %c0_i32 = arith.constant 0 : i32
    %c0_i32_0 = arith.constant 0 : i32
    %c0_i32_1 = arith.constant 0 : i32
    return %c0_i32, %arg0, %c0_i32_0 : i32, i32, i32
  }
  func.func @transform_1(%arg0: i32, %arg1: memref<3xf32, #tpu.memory_space<smem>>) -> (i32, i32) {
    %c0_i32 = arith.constant 0 : i32
    %c0_i32_0 = arith.constant 0 : i32
    return %arg0, %c0_i32 : i32, i32
  }
}

</mosaic_0001>

<bundles_post_ra>
// kernel: tpu_custom_call.1
= control target key start
LH: loop header
LB: loop body
LE: loop exit
PB: predicated region body
PF: predicated region fallthrough
CT: control target
= control target key end

     0   :  { %s128_s9 = smov [#allocation3]   ;;  %s157_s0 = inlined_call_operand.hbm [shape: f32[3], index: 0, kind: input, shape index: {}]   ;;  %s158_s1 = inlined_call_operand.hbm [shape: f32[2,8,128], index: 1, kind: input, shape index: {}]   ;;  %s159_s2 = inlined_call_operand.hbm [shape: f32[8,128], index: 2, kind: output, shape index: {}]  }
   0x1   :  { %8 = dma.hbm_to_smem %s157_s0, 16, %s128_s9, [#allocation2] }
   0x2   :  { %122 = dma.done.wait [#allocation2], 16 }
   0x3   :  { %123 = vsyncadd [#allocation2], 4294967280 }
   0x4   :  { %10 = sfence }
   0x5   :  { %11 = vsyncpa [#allocation5], 0 }
   0x6   :  { %12 = vsyncpa [#allocation6], 0  ;;  %s129_s12 = smov [#allocation4]  }
   0x7   :  { %s18_s13 = sshll.u32 %s129_s12, 4  ;;  %s19_s13 = int_to_ptr.vmem [resolvable:$true] %s18_s13 }
   0x8   :  { %s90_s14 = scalar_lea.vmem %s19_s13, 256  ;;  %p95_p1 = scmp.lt.s32.totalorder %s19_s13, %s19_s13 }
   0x9   :  { %p91_p0 = scmp.ne.s32.totalorder %s19_s13, %s90_s14  ;;  %p96_p2 = scmp.lt.s32.totalorder %s90_s14, %s90_s14 }
   0xb   :  { %p97_p3 = por %p96_p2, %p95_p1 }
   0xd   :  { %p98_p4 = pnand %p97_p3, %p91_p0 }
   0xf   :  { %101 = shalt.err (!%p98_p4)
}
  0x10   :  { %s130_s15 = smov 128   ;;  %s131_s16 = smov 8  }
  0x11   :  { %24 = dma.hbm_to_vmem [thread:$0]  %s158_s1, 256, %s19_s13, [#allocation5], %s130_s15, %s130_s15, %s131_s16  }
  0x12   :  { %124 = dma.done.wait [#allocation5], 256  }
  0x13   :  { %125 = vsyncadd [#allocation5], 4294967040  ;;  %s28_s0 = sld [smem:[#allocation3]]  ;;  %v31_v0 = vld [vmem:[#allocation4] sm:$0xff]  ;;  %v33_v1 = vld [vmem:[#allocation4 + $0x8] sm:$0xff]  ;;  %s132_s1 = smov [#allocation7]  }
  0x14   :  { %s63_s19 = sld [smem:[#allocation3 + $0x1]]  ;;  %s54_s21 = sshll.u32 %s132_s1, 4  ;;  %s55_s21 = int_to_ptr.vmem [resolvable:$true] %s54_s21 }
  0x15   :  { %s64_s20 = sld [smem:[#allocation3 + $0x2]]  ;;  %s102_s22 = scalar_lea.vmem %s55_s21, 128 }
  0x16   :  { %p103_p5 = scmp.ne.s32.totalorder %s55_s21, %s102_s22  ;;  %p107_p6 = scmp.lt.s32.totalorder %s55_s21, %s55_s21 }
  0x17   :  { %p108_p7 = scmp.lt.s32.totalorder %s102_s22, %s102_s22 }
  0x19   :  { %v34_v2 = vstv %s28_s0  ;;  %p109_p8 = por %p108_p7, %p107_p6 }
  0x1a   :  { %v35_v3 = vmul.f32 %v34_v2, %v31_v0  ;;  %v36_v4 = vstv %s63_s19 }
  0x1b   :  { %v37_v5 = vmul.f32 %v36_v4, %v33_v1  ;;  %v39_v6 = vstv %s64_s20  ;;  %p110_p9 = pnand %p109_p8, %p103_p5 }
  0x1d   :  { %v38_v7 = vadd.f32 %v37_v5, %v35_v3 }
  0x1f   :  { %v40_v8 = vadd.f32 %v39_v6, %v38_v7 }
  0x21   :  { %v41_v9 = vsub.f32 0.0, %v40_v8 }
  0x23   :  { %v42_v10 = vmul.f32 1.442695, %v41_v9 }
  0x25   :  { %70 = vpow2.f32 %v42_v10 }
  0x32   :  { %v71_v11 = vpop.eup %70 }
  0x33   :  { %v44_v12 = vadd.f32 1.0, %v71_v11 }
  0x35   :  { %72 = vrcp.f32 %v44_v12 }
  0x42   :  { %v73_v13 = vpop.eup %72 }
  0x43   :  { %47 = vst [vmem:[#allocation7] sm:$0xff] %v73_v13 }
  0x44   :  { %113 = shalt.err (!%p110_p9)
}
  0x45   :  { %57 = dma.vmem_to_hbm [thread:$0]  %s55_s21, 128, %s159_s2, [#allocation6]  }
  0x46   :  { %126 = dma.done.wait [#allocation6], 128  }
  0x47   :  { %127 = vsyncadd [#allocation6], 4294967168 }
  0x48   :  { %61 = vsyncpa [#allocation5], 1 }
  0x49   :  { %62 = vsyncpa [#allocation6], 1 }

</bundles_post_ra>
